<compile_context>
chip_gen: v7x
topology: tpu7x:2x2x1
jax: 0.10.0
libtpu: 0.0.40
codegen_flags: <defaults>
</compile_context>

<pallas_src>
import math

import jax
import jax.numpy as jnp
from jax import lax
from jax.experimental import pallas as pl
from jax.experimental.pallas import tpu as pltpu


def _make_mha_kernel(n_head: int, t_len: int, d_total: int):
    d_head = d_total // n_head
    scale = 1.0 / math.sqrt(d_head)

    def proj_head(x_bf, w_ref, b_ref):
        # x_bf: [T, D] bf16; w_ref: [dh, D] (PyTorch [out, in] row slice);
        # b_ref: [1, dh] f32.  Contract the `in` dims -> no weight transpose.
        w_bf = w_ref[...].astype(jnp.bfloat16)
        y = lax.dot_general(
            x_bf, w_bf,
            dimension_numbers=(((1,), (1,)), ((), ())),
            preferred_element_type=jnp.float32)          # [T, dh] f32 acc
        return y + b_ref[...]

    def kernel(q_ref, k_ref, v_ref,
               wq_ref, bq_ref, wk_ref, bk_ref, wv_ref, bv_ref,
               woT_ref, bo_ref, out_ref, acc_ref):
        h = pl.program_id(1)

        @pl.when(h == 0)
        def _():
            # Initialize the output-projection accumulator with the bias.
            acc_ref[...] = jnp.broadcast_to(
                bo_ref[...], acc_ref.shape).astype(jnp.float32)

        # bf16 MXU operands (f32 accumulation below).
        q_bf = q_ref[...].astype(jnp.bfloat16)
        k_bf = k_ref[...].astype(jnp.bfloat16)
        v_bf = v_ref[...].astype(jnp.bfloat16)

        # Per-head projections. Fold 1/sqrt(dh) into q.
        qp = proj_head(q_bf, wq_ref, bq_ref) * scale      # [T, dh]
        kp = proj_head(k_bf, wk_ref, bk_ref)              # [T, dh]
        vp = proj_head(v_bf, wv_ref, bv_ref)              # [T, dh]

        # score[T, T]: contract dh directly (no explicit kp.T relayout).
        score = lax.dot_general(
            qp.astype(jnp.bfloat16), kp.astype(jnp.bfloat16),
            dimension_numbers=(((1,), (1,)), ((), ())),
            preferred_element_type=jnp.float32)

        # Numerically-stable softmax kept in f32 (v5e EUP/VPU have no bf16).
        m = jnp.max(score, axis=-1, keepdims=True)
        e = jnp.exp(score - m)                            # [T, T] f32
        denom = jnp.sum(e, axis=-1, keepdims=True)        # [T, 1]

        # PV matmul on un-normalized weights, then normalize the [T, dh]
        # result (T*dh VALU muls instead of T*T, one fewer [T,T] temp).
        oh = lax.dot_general(
            e.astype(jnp.bfloat16), vp.astype(jnp.bfloat16),
            dimension_numbers=(((1,), (0,)), ((), ())),
            preferred_element_type=jnp.float32)           # [T, dh]
        oh = oh * pl.reciprocal(denom, approx=True)       # divide -> EUP slot

        # Per-head contribution to the output projection, accumulated over h.
        # woT_ref is the per-head row slice of W_concat^T, i.e. [dh, D].
        acc_ref[...] += lax.dot_general(
            oh.astype(jnp.bfloat16), woT_ref[...].astype(jnp.bfloat16),
            dimension_numbers=(((1,), (0,)), ((), ())),
            preferred_element_type=jnp.float32)           # [T, D]

        @pl.when(h == pl.num_programs(1) - 1)
        def _():
            out_ref[...] = acc_ref[...].astype(out_ref.dtype)

    return kernel


def multi_head_attention_pallas(q, k, v, params, n_head: int):
    """q, k, v: [B, T, D] float32. params: PyTorch-style Linear params."""
    B, T, D = q.shape
    assert D % n_head == 0
    dh = D // n_head
    # Per-head weight row blocks need a sublane-aligned head dim.
    assert dh % 8 == 0, "head dim must be a multiple of 8 for per-head blocking"

    # Q/K/V weights stay in PyTorch [out, in] layout (per-head slice = row block).
    wq, wk, wv = params["w_q_w"], params["w_k_w"], params["w_v_w"]
    # Per-head biases as [H, 1, dh]: BlockSpec last-two dims equal full extents.
    bq = params["w_q_b"].reshape(n_head, 1, dh)
    bk = params["w_k_b"].reshape(n_head, 1, dh)
    bv = params["w_v_b"].reshape(n_head, 1, dh)
    # Output projection: transpose once on the host so the per-head slice is a
    # row (sublane) block instead of a lane-boundary column slice.
    woT = params["w_concat_w"].T                    # [D_in, D_out]
    bo = params["w_concat_b"].reshape(1, D)

    kernel = _make_mha_kernel(n_head, T, D)

    # Batch dim squeezed -> kernel sees [T, D]; index constant across h so the
    # activations are DMA'd once per batch element.
    act_spec = pl.BlockSpec((None, T, D), lambda b, h: (b, 0, 0))
    whead_spec = pl.BlockSpec((dh, D), lambda b, h: (h, 0))
    bhead_spec = pl.BlockSpec((None, 1, dh), lambda b, h: (h, 0, 0))
    wo_spec = pl.BlockSpec((dh, D), lambda b, h: (h, 0))
    bo_spec = pl.BlockSpec((1, D), lambda b, h: (0, 0))   # resident, fetched once

    # Scoped-VMEM budget from the actual working set (+ headroom), capped at
    # ~75% of physical VMEM (v7x: 64 MiB -> 48 MiB cap; v5e/v6e: 128 -> 96 MiB).
    elt = 4  # f32
    need = (
        2 * 4 * T * D * elt            # q, k, v, out (double-buffered blocks)
        + 2 * 4 * dh * D * elt         # per-head W_q/W_k/W_v/W_oT slices (x2 bufs)
        + 2 * (3 * dh + D) * elt       # biases
        + T * D * elt                  # accumulator scratch
        + 2 * T * T * elt              # score + exp slabs (f32)
        + 3 * T * D * 2                # bf16 activation copies
        + 8 * T * dh * elt             # per-head projection temporaries
        + (4 << 20)                    # compiler slack
    )
    try:
        cap = int(pltpu.get_tpu_info().vmem_capacity_bytes * 3 // 4)
    except Exception:  # pragma: no cover - conservative fallback
        cap = 96 << 20
    vmem_limit = int(min(max(need, 32 << 20), cap))

    return pl.pallas_call(
        kernel,
        out_shape=jax.ShapeDtypeStruct((B, T, D), q.dtype),
        grid_spec=pltpu.PrefetchScalarGridSpec(
            num_scalar_prefetch=0,
            grid=(B, n_head),
            in_specs=[act_spec, act_spec, act_spec,
                      whead_spec, bhead_spec,
                      whead_spec, bhead_spec,
                      whead_spec, bhead_spec,
                      wo_spec, bo_spec],
            out_specs=act_spec,
            scratch_shapes=[pltpu.VMEM((T, D), jnp.float32)],
        ),
        compiler_params=pltpu.CompilerParams(
            dimension_semantics=("parallel", "arbitrary"),
            vmem_limit_bytes=vmem_limit),
    )(q, k, v, wq, bq, wk, bk, wv, bv, woT, bo)


def multi_head_attention_ref(q, k, v, params, n_head: int):
    """Pure-JAX f32 reference matching the (intended) PyTorch forward."""
    B, T, D = q.shape
    dh = D // n_head

    def lin(x, w, b):
        return x @ w.T + b

    qp = lin(q, params["w_q_w"], params["w_q_b"])
    kp = lin(k, params["w_k_w"], params["w_k_b"])
    vp = lin(v, params["w_v_w"], params["w_v_b"])

    def split(x):
        return x.reshape(B, T, n_head, dh).transpose(0, 2, 1, 3)  # [B,H,T,dh]

    qh, kh, vh = split(qp), split(kp), split(vp)
    score = jnp.einsum("bhqd,bhkd->bhqk", qh, kh) / math.sqrt(dh)
    score = jax.nn.softmax(score, axis=-1)
    out = jnp.einsum("bhqk,bhkd->bhqd", score, vh)
    out = out.transpose(0, 2, 1, 3).reshape(B, T, D)
    return lin(out, params["w_concat_w"], params["w_concat_b"])


def init_params(key, d_total: int):
    """Deterministic PyTorch-Linear-style params: weight [out, in], bias [out]."""
    keys = jax.random.split(key, 8)
    bound = 1.0 / math.sqrt(d_total)

    def u(k, shape):
        return jax.random.uniform(k, shape, jnp.float32, -bound, bound)

    return {
        "w_q_w": u(keys[0], (d_total, d_total)), "w_q_b": u(keys[1], (d_total,)),
        "w_k_w": u(keys[2], (d_total, d_total)), "w_k_b": u(keys[3], (d_total,)),
        "w_v_w": u(keys[4], (d_total, d_total)), "w_v_b": u(keys[5], (d_total,)),
        "w_concat_w": u(keys[6], (d_total, d_total)),
        "w_concat_b": u(keys[7], (d_total,)),
    }


if __name__ == "__main__":
    B, T, D, H = 2, 8, 32, 4

    key = jax.random.PRNGKey(0)
    kq, kk, kv, kp = jax.random.split(key, 4)
    q = jax.random.normal(kq, (B, T, D), jnp.float32)
    k = jax.random.normal(kk, (B, T, D), jnp.float32)
    v = jax.random.normal(kv, (B, T, D), jnp.float32)
    params = init_params(kp, D)

    out = multi_head_attention_pallas(q, k, v, params, n_head=H)
    out = jax.block_until_ready(out)

    ref = multi_head_attention_ref(q, k, v, params, n_head=H)
    assert out.shape == (B, T, D)
    # Tolerance accounts for bf16 MXU operands (f32 accumulation) and the
    # EUP approx-reciprocal in the softmax normalization.
    assert jnp.allclose(out, ref, atol=5e-2, rtol=5e-2), "mismatch vs reference"

    print("KERNEL_OK")
</pallas_src>

<mosaic_0001>
module attributes {stable_mosaic.version = 11 : i64} {
  func.func @kernel(%arg0: i32, %arg1: i32, %arg2: memref<1x8x32xf32, #tpu.memory_space<vmem>>, %arg3: memref<1x8x32xf32, #tpu.memory_space<vmem>>, %arg4: memref<1x8x32xf32, #tpu.memory_space<vmem>>, %arg5: memref<8x32xf32, #tpu.memory_space<vmem>>, %arg6: memref<1x1x8xf32, #tpu.memory_space<vmem>>, %arg7: memref<8x32xf32, #tpu.memory_space<vmem>>, %arg8: memref<1x1x8xf32, #tpu.memory_space<vmem>>, %arg9: memref<8x32xf32, #tpu.memory_space<vmem>>, %arg10: memref<1x1x8xf32, #tpu.memory_space<vmem>>, %arg11: memref<8x32xf32, #tpu.memory_space<vmem>>, %arg12: memref<1x32xf32, #tpu.memory_space<vmem>>, %arg13: memref<1x8x32xf32, #tpu.memory_space<vmem>>, %arg14: memref<8x32xf32, #tpu.memory_space<vmem>>) attributes {dimension_semantics = [#tpu.dimension_semantics<parallel>, #tpu.dimension_semantics<arbitrary>], iteration_bounds = array<i64: 2, 4>, scalar_prefetch = 0 : i64, scratch_operands = 1 : i64, tpu.core_type = #tpu.core_type<tc>, window_params = [{transform_indices = @transform_0, window_bounds = array<i64: 1, 8, 32>}, {transform_indices = @transform_1, window_bounds = array<i64: 1, 8, 32>}, {transform_indices = @transform_2, window_bounds = array<i64: 1, 8, 32>}, {transform_indices = @transform_3, window_bounds = array<i64: 8, 32>}, {transform_indices = @transform_4, window_bounds = array<i64: 1, 1, 8>}, {transform_indices = @transform_5, window_bounds = array<i64: 8, 32>}, {transform_indices = @transform_6, window_bounds = array<i64: 1, 1, 8>}, {transform_indices = @transform_7, window_bounds = array<i64: 8, 32>}, {transform_indices = @transform_8, window_bounds = array<i64: 1, 1, 8>}, {transform_indices = @transform_9, window_bounds = array<i64: 8, 32>}, {pipeline_mode = #tpu.pipeline_mode<synchronous>, transform_indices = @transform_10, window_bounds = array<i64: 1, 32>}, {transform_indices = @transform_11, window_bounds = array<i64: 1, 8, 32>}]} {
    %c0_i32 = arith.constant 0 : i32
    %0 = arith.cmpi eq, %arg1, %c0_i32 : i32
    %1 = arith.extui %0 : i1 to i32
    %c0_i32_0 = arith.constant 0 : i32
    %2 = arith.cmpi ne, %1, %c0_i32_0 : i32
    scf.if %2 {
      %c0_39 = arith.constant 0 : index
      %c0_40 = arith.constant 0 : index
      %61 = vector.load %arg12[%c0_39, %c0_40] : memref<1x32xf32, #tpu.memory_space<vmem>>, vector<1x32xf32>
      %62 = vector.shape_cast %61 : vector<1x32xf32> to vector<1x32xf32>
      %63 = vector.broadcast %62 : vector<1x32xf32> to vector<8x32xf32>
      %c0_41 = arith.constant 0 : index
      %c0_42 = arith.constant 0 : index
      %64 = vector.load %arg14[%c0_41, %c0_42] : memref<8x32xf32, #tpu.memory_space<vmem>>, vector<8x32xf32>
      tpu.vector_store %arg14[%c0_41, %c0_42], %63 {strides = array<i32>} : memref<8x32xf32, #tpu.memory_space<vmem>>, vector<8x32xf32>,
    } else {
    }
    %c0 = arith.constant 0 : index
    %c0_1 = arith.constant 0 : index
    %c0_2 = arith.constant 0 : index
    %3 = vector.load %arg2[%c0, %c0_1, %c0_2] : memref<1x8x32xf32, #tpu.memory_space<vmem>>, vector<1x8x32xf32>
    %4 = vector.shape_cast %3 : vector<1x8x32xf32> to vector<8x32xf32>
    %5 = arith.truncf %4 : vector<8x32xf32> to vector<8x32xbf16>
    %c0_3 = arith.constant 0 : index
    %c0_4 = arith.constant 0 : index
    %c0_5 = arith.constant 0 : index
    %6 = vector.load %arg3[%c0_3, %c0_4, %c0_5] : memref<1x8x32xf32, #tpu.memory_space<vmem>>, vector<1x8x32xf32>
    %7 = vector.shape_cast %6 : vector<1x8x32xf32> to vector<8x32xf32>
    %8 = arith.truncf %7 : vector<8x32xf32> to vector<8x32xbf16>
    %c0_6 = arith.constant 0 : index
    %c0_7 = arith.constant 0 : index
    %c0_8 = arith.constant 0 : index
    %9 = vector.load %arg4[%c0_6, %c0_7, %c0_8] : memref<1x8x32xf32, #tpu.memory_space<vmem>>, vector<1x8x32xf32>
    %10 = vector.shape_cast %9 : vector<1x8x32xf32> to vector<8x32xf32>
    %11 = arith.truncf %10 : vector<8x32xf32> to vector<8x32xbf16>
    %c0_9 = arith.constant 0 : index
    %c0_10 = arith.constant 0 : index
    %12 = vector.load %arg5[%c0_9, %c0_10] : memref<8x32xf32, #tpu.memory_space<vmem>>, vector<8x32xf32>
    %13 = arith.truncf %12 : vector<8x32xf32> to vector<8x32xbf16>
    %cst = arith.constant dense<0.000000e+00> : vector<8x8xf32>
    %14 = tpu.matmul %5, %13, %cst {dimension_numbers = #tpu.dot_dimension_numbers<[1], [1], [0], [0], [0, 0, 1, 0], [], []>} : vector<8x32xbf16>, vector<8x32xbf16>, vector<8x8xf32> -> vector<8x8xf32>
    %c0_11 = arith.constant 0 : index
    %c0_12 = arith.constant 0 : index
    %c0_13 = arith.constant 0 : index
    %15 = vector.load %arg6[%c0_11, %c0_12, %c0_13] : memref<1x1x8xf32, #tpu.memory_space<vmem>>, vector<1x1x8xf32>
    %16 = vector.shape_cast %15 : vector<1x1x8xf32> to vector<1x8xf32>
    %17 = vector.broadcast %16 : vector<1x8xf32> to vector<8x8xf32>
    %18 = arith.addf %14, %17 : vector<8x8xf32>
    %cst_14 = arith.constant 0.353553385 : f32
    %19 = vector.broadcast %cst_14 : f32 to vector<8x8xf32>
    %20 = arith.mulf %18, %19 : vector<8x8xf32>
    %c0_15 = arith.constant 0 : index
    %c0_16 = arith.constant 0 : index
    %21 = vector.load %arg7[%c0_15, %c0_16] : memref<8x32xf32, #tpu.memory_space<vmem>>, vector<8x32xf32>
    %22 = arith.truncf %21 : vector<8x32xf32> to vector<8x32xbf16>
    %cst_17 = arith.constant dense<0.000000e+00> : vector<8x8xf32>
    %23 = tpu.matmul %8, %22, %cst_17 {dimension_numbers = #tpu.dot_dimension_numbers<[1], [1], [0], [0], [0, 0, 1, 0], [], []>} : vector<8x32xbf16>, vector<8x32xbf16>, vector<8x8xf32> -> vector<8x8xf32>
    %c0_18 = arith.constant 0 : index
    %c0_19 = arith.constant 0 : index
    %c0_20 = arith.constant 0 : index
    %24 = vector.load %arg8[%c0_18, %c0_19, %c0_20] : memref<1x1x8xf32, #tpu.memory_space<vmem>>, vector<1x1x8xf32>
    %25 = vector.shape_cast %24 : vector<1x1x8xf32> to vector<1x8xf32>
    %26 = vector.broadcast %25 : vector<1x8xf32> to vector<8x8xf32>
    %27 = arith.addf %23, %26 : vector<8x8xf32>
    %c0_21 = arith.constant 0 : index
    %c0_22 = arith.constant 0 : index
    %28 = vector.load %arg9[%c0_21, %c0_22] : memref<8x32xf32, #tpu.memory_space<vmem>>, vector<8x32xf32>
    %29 = arith.truncf %28 : vector<8x32xf32> to vector<8x32xbf16>
    %cst_23 = arith.constant dense<0.000000e+00> : vector<8x8xf32>
    %30 = tpu.matmul %11, %29, %cst_23 {dimension_numbers = #tpu.dot_dimension_numbers<[1], [1], [0], [0], [0, 0, 1, 0], [], []>} : vector<8x32xbf16>, vector<8x32xbf16>, vector<8x8xf32> -> vector<8x8xf32>
    %c0_24 = arith.constant 0 : index
    %c0_25 = arith.constant 0 : index
    %c0_26 = arith.constant 0 : index
    %31 = vector.load %arg10[%c0_24, %c0_25, %c0_26] : memref<1x1x8xf32, #tpu.memory_space<vmem>>, vector<1x1x8xf32>
    %32 = vector.shape_cast %31 : vector<1x1x8xf32> to vector<1x8xf32>
    %33 = vector.broadcast %32 : vector<1x8xf32> to vector<8x8xf32>
    %34 = arith.addf %30, %33 : vector<8x8xf32>
    %35 = arith.truncf %20 : vector<8x8xf32> to vector<8x8xbf16>
    %36 = arith.truncf %27 : vector<8x8xf32> to vector<8x8xbf16>
    %cst_27 = arith.constant dense<0.000000e+00> : vector<8x8xf32>
    %37 = tpu.matmul %35, %36, %cst_27 {dimension_numbers = #tpu.dot_dimension_numbers<[1], [1], [0], [0], [0, 0, 1, 0], [], []>} : vector<8x8xbf16>, vector<8x8xbf16>, vector<8x8xf32> -> vector<8x8xf32>
    %cst_28 = arith.constant dense<0xFF800000> : vector<8xf32>
    %38 = vector.multi_reduction <maximumf>, %37, %cst_28 [1] : vector<8x8xf32> to vector<8xf32>
    %39 = vector.shape_cast %38 : vector<8xf32> to vector<8x1xf32>
    %40 = vector.broadcast %39 : vector<8x1xf32> to vector<8x8xf32>
    %41 = arith.subf %37, %40 : vector<8x8xf32>
    %42 = math.exp %41 : vector<8x8xf32>
    %cst_29 = arith.constant dense<0.000000e+00> : vector<8xf32>
    %43 = vector.multi_reduction <add>, %42, %cst_29 [1] : vector<8x8xf32> to vector<8xf32>
    %44 = vector.shape_cast %43 : vector<8xf32> to vector<8x1xf32>
    %45 = arith.truncf %42 : vector<8x8xf32> to vector<8x8xbf16>
    %46 = arith.truncf %34 : vector<8x8xf32> to vector<8x8xbf16>
    %cst_30 = arith.constant dense<0.000000e+00> : vector<8x8xf32>
    %47 = tpu.matmul %45, %46, %cst_30 {dimension_numbers = #tpu.dot_dimension_numbers<[1], [0], [0], [1], [0, 0, 1, 1], [], []>} : vector<8x8xbf16>, vector<8x8xbf16>, vector<8x8xf32> -> vector<8x8xf32>
    %48 = tpu.reciprocal %44 {approx = true} : vector<8x1xf32> -> vector<8x1xf32>
    %49 = vector.broadcast %48 : vector<8x1xf32> to vector<8x8xf32>
    %50 = arith.mulf %47, %49 : vector<8x8xf32>
    %c0_31 = arith.constant 0 : index
    %c0_32 = arith.constant 0 : index
    %51 = vector.load %arg14[%c0_31, %c0_32] : memref<8x32xf32, #tpu.memory_space<vmem>>, vector<8x32xf32>
    %52 = arith.truncf %50 : vector<8x8xf32> to vector<8x8xbf16>
    %c0_33 = arith.constant 0 : index
    %c0_34 = arith.constant 0 : index
    %53 = vector.load %arg11[%c0_33, %c0_34] : memref<8x32xf32, #tpu.memory_space<vmem>>, vector<8x32xf32>
    %54 = arith.truncf %53 : vector<8x32xf32> to vector<8x32xbf16>
    %cst_35 = arith.constant dense<0.000000e+00> : vector<8x32xf32>
    %55 = tpu.matmul %52, %54, %cst_35 {dimension_numbers = #tpu.dot_dimension_numbers<[1], [0], [0], [1], [0, 0, 1, 1], [], []>} : vector<8x8xbf16>, vector<8x32xbf16>, vector<8x32xf32> -> vector<8x32xf32>
    %56 = arith.addf %51, %55 : vector<8x32xf32>
    %c0_36 = arith.constant 0 : index
    %c0_37 = arith.constant 0 : index
    %57 = vector.load %arg14[%c0_36, %c0_37] : memref<8x32xf32, #tpu.memory_space<vmem>>, vector<8x32xf32>
    tpu.vector_store %arg14[%c0_36, %c0_37], %56 {strides = array<i32>} : memref<8x32xf32, #tpu.memory_space<vmem>>, vector<8x32xf32>,
    %c3_i32 = arith.constant 3 : i32
    %58 = arith.cmpi eq, %arg1, %c3_i32 : i32
    %59 = arith.extui %58 : i1 to i32
    %c0_i32_38 = arith.constant 0 : i32
    %60 = arith.cmpi ne, %59, %c0_i32_38 : i32
    scf.if %60 {
      %c0_39 = arith.constant 0 : index
      %c0_40 = arith.constant 0 : index
      %61 = vector.load %arg14[%c0_39, %c0_40] : memref<8x32xf32, #tpu.memory_space<vmem>>, vector<8x32xf32>
      %c0_41 = arith.constant 0 : index
      %c0_42 = arith.constant 0 : index
      %c0_43 = arith.constant 0 : index
      %62 = vector.load %arg13[%c0_41, %c0_42, %c0_43] : memref<1x8x32xf32, #tpu.memory_space<vmem>>, vector<1x8x32xf32>
      %63 = vector.shape_cast %62 : vector<1x8x32xf32> to vector<8x32xf32>
      %64 = vector.shape_cast %61 : vector<8x32xf32> to vector<1x8x32xf32>
      tpu.vector_store %arg13[%c0_41, %c0_42, %c0_43], %64 {strides = array<i32>} : memref<1x8x32xf32, #tpu.memory_space<vmem>>, vector<1x8x32xf32>,
    } else {
    }
    return
  }
  func.func @transform_0(%arg0: i32, %arg1: i32) -> (i32, i32, i32) {
    %c0_i32 = arith.constant 0 : i32
    %c0_i32_0 = arith.constant 0 : i32
    %c0_i32_1 = arith.constant 0 : i32
    return %arg0, %c0_i32, %c0_i32_0 : i32, i32, i32
  }
  func.func @transform_1(%arg0: i32, %arg1: i32) -> (i32, i32, i32) {
    %c0_i32 = arith.constant 0 : i32
    %c0_i32_0 = arith.constant 0 : i32
    %c0_i32_1 = arith.constant 0 : i32
    return %arg0, %c0_i32, %c0_i32_0 : i32, i32, i32
  }
  func.func @transform_2(%arg0: i32, %arg1: i32) -> (i32, i32, i32) {
    %c0_i32 = arith.constant 0 : i32
    %c0_i32_0 = arith.constant 0 : i32
    %c0_i32_1 = arith.constant 0 : i32
    return %arg0, %c0_i32, %c0_i32_0 : i32, i32, i32
  }
  func.func @transform_3(%arg0: i32, %arg1: i32) -> (i32, i32) {
    %c0_i32 = arith.constant 0 : i32
    %c0_i32_0 = arith.constant 0 : i32
    return %arg1, %c0_i32 : i32, i32
  }
  func.func @transform_4(%arg0: i32, %arg1: i32) -> (i32, i32, i32) {
    %c0_i32 = arith.constant 0 : i32
    %c0_i32_0 = arith.constant 0 : i32
    %c0_i32_1 = arith.constant 0 : i32
    return %arg1, %c0_i32, %c0_i32_0 : i32, i32, i32
  }
  func.func @transform_5(%arg0: i32, %arg1: i32) -> (i32, i32) {
    %c0_i32 = arith.constant 0 : i32
    %c0_i32_0 = arith.constant 0 : i32
    return %arg1, %c0_i32 : i32, i32
  }
  func.func @transform_6(%arg0: i32, %arg1: i32) -> (i32, i32, i32) {
    %c0_i32 = arith.constant 0 : i32
    %c0_i32_0 = arith.constant 0 : i32
    %c0_i32_1 = arith.constant 0 : i32
    return %arg1, %c0_i32, %c0_i32_0 : i32, i32, i32
  }
  func.func @transform_7(%arg0: i32, %arg1: i32) -> (i32, i32) {
    %c0_i32 = arith.constant 0 : i32
    %c0_i32_0 = arith.constant 0 : i32
    return %arg1, %c0_i32 : i32, i32
  }
  func.func @transform_8(%arg0: i32, %arg1: i32) -> (i32, i32, i32) {
    %c0_i32 = arith.constant 0 : i32
    %c0_i32_0 = arith.constant 0 : i32
    %c0_i32_1 = arith.constant 0 : i32
    return %arg1, %c0_i32, %c0_i32_0 : i32, i32, i32
  }
  func.func @transform_9(%arg0: i32, %arg1: i32) -> (i32, i32) {
    %c0_i32 = arith.constant 0 : i32
    %c0_i32_0 = arith.constant 0 : i32
    return %arg1, %c0_i32 : i32, i32
  }
  func.func @transform_10(%arg0: i32, %arg1: i32) -> (i32, i32) {
    %c0_i32 = arith.constant 0 : i32
    %c0_i32_0 = arith.constant 0 : i32
    %c0_i32_1 = arith.constant 0 : i32
    return %c0_i32, %c0_i32_0 : i32, i32
  }
  func.func @transform_11(%arg0: i32, %arg1: i32) -> (i32, i32, i32) {
    %c0_i32 = arith.constant 0 : i32
    %c0_i32_0 = arith.constant 0 : i32
    %c0_i32_1 = arith.constant 0 : i32
    return %arg0, %c0_i32, %c0_i32_0 : i32, i32, i32
  }
}

</mosaic_0001>

<bundles_post_ra>
// kernel: tpu_custom_call.1
= control target key start
LH: loop header
LB: loop body
LE: loop exit
PB: predicated region body
PF: predicated region fallthrough
CT: control target
= control target key end

     0   :  { %s2629_s0 = inlined_call_operand.hbm [shape: f32[2,8,32], index: 0, kind: input, shape index: {}]   ;;  %s2630_s1 = inlined_call_operand.hbm [shape: f32[2,8,32], index: 1, kind: input, shape index: {}]   ;;  %s2631_s2 = inlined_call_operand.hbm [shape: f32[2,8,32], index: 2, kind: input, shape index: {}]   ;;  %s2632_s3 = inlined_call_operand.hbm [shape: f32[32,32], index: 3, kind: input, shape index: {}]   ;;  %s2633_s4 = inlined_call_operand.hbm [shape: f32[4,1,8], index: 4, kind: input, shape index: {}]   ;;  %s2634_s5 = inlined_call_operand.hbm [shape: f32[32,32], index: 5, kind: input, shape index: {}]   ;;  %s2635_s6 = inlined_call_operand.hbm [shape: f32[4,1,8], index: 6, kind: input, shape index: {}]   ;;  %s2636_s7 = inlined_call_operand.hbm [shape: f32[32,32], index: 7, kind: input, shape index: {}]   ;;  %s2637_s8 = inlined_call_operand.hbm [shape: f32[4,1,8], index: 8, kind: input, shape index: {}]   ;;  %s2638_s9 = inlined_call_operand.vmem [shape: f32[32,32], index: 9, kind: input, shape index: {}]   ;;  %s2639_s10 = inlined_call_operand.vmem [shape: f32[1,32], index: 10, kind: input, shape index: {}]   ;;  %s2640_s11 = inlined_call_operand.hbm [shape: f32[2,8,32], index: 11, kind: output, shape index: {}]  }
   0x1   :  { %2674 = sst [smem:[#allocation42_spill]] %s2630_s1 }
   0x2   :  { %2675 = sst [smem:[#allocation43_spill]] %s2632_s3 }
   0x3   :  { %2676 = sst [smem:[#allocation44_spill]] %s2637_s8 }
   0x4   :  { %2677 = sst [smem:[#allocation45_spill]] %s2638_s9 }
   0x5   :  { %2678 = sst [smem:[#allocation46_spill]] %s2639_s10 }
   0x6   :  { %2679 = sst [smem:[#allocation47_spill]] %s2640_s11 }
   0x7   :  { %16 = vsyncpa [#allocation4], 0 }
   0x8   :  { %18 = vsyncpa [#allocation4 + $0x1], 0 }
   0x9   :  { %19 = vsyncpa [#allocation7], 0 }
   0xa   :  { %21 = vsyncpa [#allocation7 + $0x1], 0 }
   0xb   :  { %22 = vsyncpa [#allocation10], 0 }
   0xc   :  { %24 = vsyncpa [#allocation10 + $0x1], 0 }
   0xd   :  { %25 = vsyncpa [#allocation13], 0 }
   0xe   :  { %27 = vsyncpa [#allocation13 + $0x1], 0 }
   0xf   :  { %28 = vsyncpa [#allocation16], 0 }
  0x10   :  { %30 = vsyncpa [#allocation16 + $0x1], 0 }
  0x11   :  { %31 = vsyncpa [#allocation5], 0 }
  0x12   :  { %33 = vsyncpa [#allocation5 + $0x1], 0  ;;  %s2052_s17 = smov 0   ;;  %s2054_s18 = smov 0  }
  0x13   :  { %s2056_s19 = smov 0   ;;  %s2058_s20 = smov 0  }
  0x14   :  { %s2060_s21 = smov 0   ;;  %s2062_s22 = smov 0  }
  0x15   :  { %s2064_s23 = smov 0   ;;  %s2066_s24 = smov 0  }
  0x16   :  { %s2068_s25 = smov 0   ;;  %s2070_s26 = smov 0  }
  0x17   :  { %s2072_s27 = smov 0  }
  0x18 LB: > { %2680 = sst [smem:[#allocation25_spill]] %s1942_s18  ;;  %s2106_s28 = sadd.s32 4294967295, %s1978_s27   ;;  %s1978_s27 = sphi %s2072_s27, %s39_s27   ;;  %s1974_s26 = sphi %s2070_s26, %s2762_s26   ;;  %s1970_s25 = sphi %s2068_s25, %s2766_s25   ;;  %s1966_s24 = sphi %s2066_s24, %s2760_s24   ;;  %s1962_s23 = sphi %s2064_s23, %s2765_s23   ;;  %s1958_s22 = sphi %s2062_s22, %s2764_s22   ;;  %s1954_s21 = sphi %s2060_s21, %s2763_s21   ;;  %s1950_s20 = sphi %s2058_s20, %s2759_s20   ;;  %s1946_s19 = sphi %s2056_s19, %s2758_s19   ;;  %s1942_s18 = sphi %s2054_s18, %s2757_s18   ;;  %s1938_s17 = sphi %s2052_s17, %s2756_s17  }
  0x19   : > { %2681 = sst [smem:[#allocation26_spill]] %s1946_s19  ;;  %s1331_s29 = sadd.s32 4294967294, %s1978_s27  }
  0x1a   : > { %2682 = sst [smem:[#allocation27_spill]] %s1950_s20  ;;  %p65_p0 = scmp.ne.s32.totalorder %s1958_s22, %s1954_s21 }
  0x1b   : > { %2683 = sst [smem:[#allocation28_spill]] %s1954_s21  ;;  %p66_p1 = scmp.eq.s32.totalorder %s1978_s27, 0 }
  0x1c   : > { %2684 = sst [smem:[#allocation29_spill]] %s1962_s23  ;;  %p71_p2 = scmp.ne.s32.totalorder %s1954_s21, %s1950_s20 }
  0x1d   : > { %2685 = sst [smem:[#allocation30_spill]] %s1966_s24  ;;  %p72_p3 = scmp.eq.s32.totalorder %s2106_s28, 0 }
  0x1e   : > { %2686 = sst [smem:[#allocation31_spill]] %s1974_s26  ;;  %p2117_p4 = por %p66_p1, %p65_p0 }
  0x1f   : > { %2687 = sst [smem:[#allocation32_spill]] %s1978_s27  ;;  %p143_p5 = scmp.ne.s32.totalorder %s1946_s19, %s1942_s18 }
  0x20   : > { %2688 = sst [smem:[#allocation33_spill]] %s2106_s28  ;;  %p2123_p6 = por %p72_p3, %p71_p2 }
  0x21   : > { %p149_p7 = scmp.ne.s32.totalorder %s1942_s18, %s1938_s17  ;;  %p2128_p8 = por %p143_p5, %p66_p1 }
  0x22   : > { %s2690_s14 = scalar_select %p2123_p6, 1, 0 }
  0x23   : > { %p350_p9 = scmp.eq.s32.totalorder %s2106_s28, 7  ;;  %p2133_p10 = por %p149_p7, %p72_p3 }
  0x24   : > { %2691 = sst [smem:[#allocation34_spill]] %s2690_s14  ;;  %p356_p11 = scmp.eq.s32.totalorder %s1331_s29, 7 }
  0x25   : > { %s2693_s16 = scalar_select %p2133_p10, 1, 0 }
  0x26   : > { %p2137_p12 = por %p350_p9, %p65_p0  ;;  %p2141_p13 = por %p356_p11, %p71_p2 }
  0x27   : > { %2694 = sst [smem:[#allocation35_spill]] %s2693_s16  ;;  %p1474_p6 = scmp.lt.s32.totalorder %s1978_s27, 8 }
  0x28   : > { %s2695_s12 = scalar_select %p2137_p12, 1, 0 }
  0x29   : > { %s2697_s30 = scalar_select %p2141_p13, 1, 0 }
  0x2a   : > { %2696 = sst [smem:[#allocation36_spill]] %s2695_s12  ;;  %s2647_s17 = sand.u32 1, %s1958_s22  }
  0x2b   : > { %2698 = sst [smem:[#allocation37_spill]] %s2697_s30  ;;  %s2148_s20 = sshll.u32 %s1974_s26, 7 }
  0x2c   : > { %s2152_s11 = sshll.u32 %s2647_s17, 3  ;;  %p2156_p1 = pnand %p1474_p6, %p2117_p4 }
  0x2d   : > { %s2161_s12 = sand.u32 1, %s1978_s27   ;;  %s2700_s1 = sld [smem:[#allocation42_spill]] }
  0x2e   : > { %s2699_s29 = scalar_select %p2156_p1, 1, 0 }
  0x2f   : > { %s401_s17 = scalar_lea.vmem [#allocation6], %s2152_s11  ;;  %p2174_p0 = pnand %p1474_p6, %p2128_p8 }
  0x30   : > { %s408_s13 = sshll.u32 %s401_s17, 4  ;;  %p2183_p3 = pneg %p2156_p1  ;;  %s2170_s13 = int_to_ptr.vmem [resolvable:$true] %s408_s13 }
  0x31   : > { %s2701_s9 = scalar_select %p2174_p0, 1, 0 }
  0x32   : > { %s2702_s10 = scalar_select %p2183_p3, 1, 0 }
  0x33   : > { %s2167_s30 = scalar_lea.hbm %s2700_s1, %s2148_s20  ;;  %s1575_s15 = scalar_lea.hbm %s2700_s1, 256 }
  0x34   : > { %s1570_s16 = scalar_lea.hbm %s2167_s30, 128  ;;  %p1576_p6 = scmp.lt.u32.totalorder %s2167_s30, %s2700_s1 }
  0x35   : > { %p1571_p2 = scmp.ne.s32.totalorder %s2167_s30, %s1570_s16  ;;  %p1577_p7 = scmp.lt.u32.totalorder %s1575_s15, %s1570_s16 }
  0x36   : > { %p1579_p9 = scmp.lt.u32.totalorder %s1570_s16, %s2167_s30 }
  0x37   : > { %p1573_p4 = pnand %p2183_p3, %p1571_p2  ;;  %p1578_p8 = por %p1577_p7, %p1576_p6 }
  0x39   : > { %p1574_p5 = pneg %p1573_p4  ;;  %p1580_p11 = por %p1579_p9, %p1578_p8 }
  0x3b   : > { %p1581_p13 = pnand %p1580_p11, %p1574_p5 }
  0x3d   : > { %1584 = shalt.err (!%p1581_p13)
}
  0x3e   : > { %s1585_s23 = scalar_lea.vmem %s2170_s13, 128  ;;  %s1980_s24 = smov [#allocation6]  }
  0x3f   : > { %p1586_p2 = scmp.ne.s32.totalorder %s2170_s13, %s1585_s23  ;;  %s1590_s17 = sshll.u32 %s1980_s24, 4  ;;  %s1591_s17 = int_to_ptr.vmem [resolvable:$false] %s1590_s17 }
  0x40   : > { %s1592_s18 = scalar_lea.vmem %s1591_s17, 256  ;;  %p1593_p10 = scmp.lt.s32.totalorder %s2170_s13, %s1591_s17 }
  0x41   : > { %p1588_p4 = pnand %p1586_p2, %p2183_p3  ;;  %p1594_p0 = scmp.lt.s32.totalorder %s1592_s18, %s1585_s23 }
  0x43   : > { %p1589_p12 = pneg %p1588_p4  ;;  %p1595_p6 = por %p1594_p0, %p1593_p10 }
  0x45   : > { %p1596_p7 = pnand %p1595_p6, %p1589_p12 }
  0x47   : > { %1599 = shalt.err (!%p1596_p7)
}
  0x48   : > { %s2703_s28 = scalar_lea.sflag [#allocation7], %s2161_s12  ;;  %p1349_p13 = scmp.ge.s32.totalorder %s1978_s27, 1 }
  0x49   : > { %1448 = dma.hbm_to_vmem [thread:$0]  (!%p2156_p1), %s2167_s30, 128, %s2170_s13, %s2703_s28  }
  0x4a   : > { %p543_p10 = scmp.lt.s32.totalorder %s1978_s27, 9  ;;  %s136_s23 = sadd.s32 1, %s1946_s19 }
  0x4b   : > { %s48_s15 = sadd.s32 1, %s1970_s25  ;;  %s2217_s24 = sand.u32 1, %s1946_s19  }
  0x4c   : > { %p2211_p12 = pnand %p1349_p13, %p543_p10  ;;  %p49_p0 = scmp.ge.s32.totalorder %s48_s15, 4 }
  0x4d   : > { %s2220_s17 = sshll.u32 %s1970_s25, 7  ;;  %s2707_s30 = sadd.s32 1, %s1974_s26 }
  0x4e   : > { %s2704_s16 = scalar_select %p2211_p12, 1, 0 }
  0x4f   : > { %s2768_s15 = smov (%p49_p0, %s48_s15), 0  ;;  %s2770_s30 = smov (!%p49_p0, %s2707_s30), %s1974_s26 }
  0x50   : > { %2705 = sst [smem:[#allocation38_spill]] %s2704_s16  ;;  %s133_s13 = ssub.s32 %s1970_s25, %s2768_s15 }
  0x51   : > { %2706 = sst [smem:[#allocation39_spill]] %s2768_s15  ;;  %s2230_s18 = sshll.u32 %s2217_s24, 3 }
  0x52   : > { %p53_p5 = scmp.ge.s32.totalorder %s2770_s30, 2  ;;  %p134_p8 = scmp.eq.s32.totalorder %s133_s13, 0 }
  0x53   : > { %s2708_s3 = sld [smem:[#allocation43_spill]]  ;;  %s437_s21 = scalar_lea.vmem [#allocation9], %s2230_s18 }
  0x54   : > { %s2772_s30 = smov (%p53_p5, %s2770_s30), 0  ;;  %s444_s16 = sshll.u32 %s437_s21, 4  ;;  %s2250_s16 = int_to_ptr.vmem [resolvable:$true] %s444_s16 }
  0x55   : > { %2709 = sst [smem:[#allocation40_spill]] %s2772_s30  ;;  %s55_s15 = ssub.s32 %s1974_s26, %s2772_s30 }
  0x56   : > { %s2241_s14 = scalar_select %p134_p8, %s1946_s19, %s136_s23  }
  0x57   : > { %p2246_p9 = scmp.eq.s32.totalorder %s55_s15, 0  ;;  %p2712_p2 = scmp.ne.s32.totalorder %s2701_s9, 0 }
  0x58   : > { %2710 = sst [smem:[#allocation41_spill]] %s2241_s14 }
  0x59   : > { %s2236_s27 = scalar_lea.hbm %s2708_s3, %s2220_s17  ;;  %p2257_p4 = pneg %p2712_p2 }
  0x5a   : > { %s2711_s8 = scalar_select %p2246_p9, 1, 0 }
  0x5b   : > { %s1600_s13 = scalar_lea.hbm %s2236_s27, 128  ;;  %s1605_s15 = scalar_lea.hbm %s2708_s3, 512 }
  0x5c   : > { %p1601_p11 = scmp.ne.s32.totalorder %s2236_s27, %s1600_s13  ;;  %p1606_p13 = scmp.lt.u32.totalorder %s2236_s27, %s2708_s3 }
  0x5d   : > { %s2713_s28 = scalar_select %p2257_p4, 1, 0 }
  0x5e   : > { %p1603_p6 = pnand %p2257_p4, %p1601_p11  ;;  %p1607_p10 = scmp.lt.u32.totalorder %s1605_s15, %s1600_s13 }
  0x5f   : > { %p1609_p5 = scmp.lt.u32.totalorder %s1600_s13, %s2236_s27 }
  0x60   : > { %p1604_p7 = pneg %p1603_p6  ;;  %p1608_p0 = por %p1607_p10, %p1606_p13 }
  0x62   : > { %p1610_p8 = por %p1609_p5, %p1608_p0 }
  0x64   : > { %p1611_p12 = pnand %p1610_p8, %p1604_p7 }
  0x66   : > { %1614 = shalt.err (!%p1611_p12)
}
  0x67   : > { %s1615_s1 = scalar_lea.vmem %s2250_s16, 128  ;;  %s1981_s23 = smov [#allocation9]  }
  0x68   : > { %p1616_p11 = scmp.ne.s32.totalorder %s2250_s16, %s1615_s1  ;;  %s1620_s21 = sshll.u32 %s1981_s23, 4  ;;  %s1621_s21 = int_to_ptr.vmem [resolvable:$false] %s1620_s21 }
  0x69   : > { %s1622_s26 = scalar_lea.vmem %s1621_s21, 256  ;;  %p1623_p3 = scmp.lt.s32.totalorder %s2250_s16, %s1621_s21 }
  0x6a   : > { %p1618_p6 = pnand %p1616_p11, %p2257_p4  ;;  %p1624_p9 = scmp.lt.s32.totalorder %s1622_s26, %s1615_s1 }
  0x6c   : > { %p1619_p1 = pneg %p1618_p6  ;;  %p1625_p13 = por %p1624_p9, %p1623_p3 }
  0x6e   : > { %p1626_p10 = pnand %p1625_p13, %p1619_p1 }
  0x70   : > { %1629 = shalt.err (!%p1626_p10)
}
  0x71   : > { %s2714_s30 = scalar_lea.sflag [#allocation10], %s2161_s12  ;;  %s2715_s13 = sadd.s32 1, %s1958_s22 }
  0x72   : > { %1454 = dma.hbm_to_vmem [thread:$0]  (!%p2712_p2), %s2236_s27, 128, %s2250_s16, %s2714_s30  }
  0x73   : > { %p2716_p12 = scmp.ne.s32.totalorder %s2711_s8, 0  ;;  %s2293_s21 = scalar_lea.hbm %s2634_s5, %s2220_s17 }
  0x74   : > { %s472_s26 = scalar_lea.vmem [#allocation12], %s2230_s18  ;;  %s469_s14 = scalar_lea.sflag [#allocation13], %s2161_s12 }
  0x75   : > { %s2287_s1 = scalar_select %p2716_p12, %s1958_s22, %s2715_s13  }
  0x76   : > { %s479_s3 = sshll.u32 %s472_s26, 4  ;;  %s1630_s19 = scalar_lea.hbm %s2293_s21, 128  ;;  %s480_s3 = int_to_ptr.vmem [resolvable:$true] %s479_s3 }
  0x77   : > { %p1631_p1 = scmp.ne.s32.totalorder %s2293_s21, %s1630_s19  ;;  %s1635_s16 = scalar_lea.hbm %s2634_s5, 512 }
  0x78   : > { %p1636_p7 = scmp.lt.u32.totalorder %s2293_s21, %s2634_s5  ;;  %p1637_p0 = scmp.lt.u32.totalorder %s1635_s16, %s1630_s19 }
  0x79   : > { %p1633_p3 = pnand %p1631_p1, %p2257_p4  ;;  %p1639_p8 = scmp.lt.u32.totalorder %s1630_s19, %s2293_s21 }
  0x7a   : > { %p1638_p5 = por %p1637_p0, %p1636_p7 }
  0x7b   : > { %p1634_p9 = pneg %p1633_p3 }
  0x7c   : > { %p1640_p11 = por %p1639_p8, %p1638_p5 }
  0x7e   : > { %p1641_p6 = pnand %p1640_p11, %p1634_p9 }
  0x80   : > { %1644 = shalt.err (!%p1641_p6)
}
  0x81   : > { %s1645_s15 = scalar_lea.vmem %s480_s3, 128  ;;  %s1982_s23 = smov [#allocation12]  }
  0x82   : > { %p1646_p13 = scmp.ne.s32.totalorder %s480_s3, %s1645_s15  ;;  %s1650_s26 = sshll.u32 %s1982_s23, 4  ;;  %s1651_s26 = int_to_ptr.vmem [resolvable:$false] %s1650_s26 }
  0x83   : > { %s1652_s8 = scalar_lea.vmem %s1651_s26, 256  ;;  %p1653_p1 = scmp.lt.s32.totalorder %s480_s3, %s1651_s26 }
  0x84   : > { %p1648_p10 = pnand %p1646_p13, %p2257_p4  ;;  %p1654_p3 = scmp.lt.s32.totalorder %s1652_s8, %s1645_s15 }
  0x86   : > { %p1649_p12 = pneg %p1648_p10  ;;  %p1655_p2 = por %p1654_p3, %p1653_p1 }
  0x88   : > { %p1656_p0 = pnand %p1655_p2, %p1649_p12 }
  0x8a   : > { %1659 = shalt.err (!%p1656_p0)
}
  0x8b   : > { %p2717_p7 = scmp.ne.s32.totalorder %s2701_s9, 0  ;;  %s2320_s16 = scalar_lea.hbm %s2636_s7, %s2220_s17 }
  0x8c   : > { %s507_s30 = scalar_lea.vmem [#allocation15], %s2230_s18  ;;  %s504_s15 = scalar_lea.sflag [#allocation16], %s2161_s12 }
  0x8d   : > { %1460 = dma.hbm_to_vmem [thread:$0]  (!%p2717_p7), %s2293_s21, 128, %s480_s3, %s469_s14  }
  0x8e   : > { %s514_s13 = sshll.u32 %s507_s30, 4  ;;  %s1660_s23 = scalar_lea.hbm %s2320_s16, 128  ;;  %s515_s13 = int_to_ptr.vmem [resolvable:$true] %s514_s13 }
  0x8f   : > { %p1661_p2 = scmp.ne.s32.totalorder %s2320_s16, %s1660_s23  ;;  %s1665_s21 = scalar_lea.hbm %s2636_s7, 512 }
  0x90   : > { %p1666_p8 = scmp.lt.u32.totalorder %s2320_s16, %s2636_s7  ;;  %p1667_p11 = scmp.lt.u32.totalorder %s1665_s21, %s1660_s23 }
  0x91   : > { %p1663_p9 = pnand %p1661_p2, %p2257_p4  ;;  %p1669_p13 = scmp.lt.u32.totalorder %s1660_s23, %s2320_s16 }
  0x92   : > { %p1668_p6 = por %p1667_p11, %p1666_p8 }
  0x93   : > { %p1664_p5 = pneg %p1663_p9 }
  0x94   : > { %p1670_p10 = por %p1669_p13, %p1668_p6 }
  0x96   : > { %p1671_p12 = pnand %p1670_p10, %p1664_p5 }
  0x98   : > { %1674 = shalt.err (!%p1671_p12)
}
  0x99   : > { %s1675_s18 = scalar_lea.vmem %s515_s13, 128  ;;  %s1983_s19 = smov [#allocation15]  }
  0x9a   : > { %p1676_p1 = scmp.ne.s32.totalorder %s515_s13, %s1675_s18  ;;  %s1680_s27 = sshll.u32 %s1983_s19, 4  ;;  %s1681_s27 = int_to_ptr.vmem [resolvable:$false] %s1680_s27 }
  0x9b   : > { %s1682_s30 = scalar_lea.vmem %s1681_s27, 256  ;;  %p1683_p2 = scmp.lt.s32.totalorder %s515_s13, %s1681_s27 }
  0x9c   : > { %p1678_p3 = pnand %p1676_p1, %p2257_p4  ;;  %p1684_p9 = scmp.lt.s32.totalorder %s1682_s30, %s1675_s18 }
  0x9e   : > { %p1679_p0 = pneg %p1678_p3  ;;  %p1685_p7 = por %p1684_p9, %p1683_p2 }
  0xa0   : > { %p1686_p8 = pnand %p1685_p7, %p1679_p0 }
  0xa2   : > { %1689 = shalt.err (!%p1686_p8)
}
  0xa3   : > { %p2718_p11 = scmp.ne.s32.totalorder %s2701_s9, 0  ;;  %s2347_s3 = scalar_lea.hbm %s2629_s0, %s2148_s20 }
  0xa4   : > { %s383_s21 = scalar_lea.vmem [#allocation3], %s2152_s11  ;;  %s2719_s17 = sand.u32 1, %s1958_s22  }
  0xa5   : > { %1466 = dma.hbm_to_vmem [thread:$0]  (!%p2718_p11), %s2320_s16, 128, %s515_s13, %s504_s15  }
  0xa6   : > { %s390_s8 = sshll.u32 %s383_s21, 4  ;;  %s380_s18 = scalar_lea.sflag [#allocation4], %s2719_s17  ;;  %s391_s8 = int_to_ptr.vmem [resolvable:$true] %s390_s8 }
  0xa7   : > { %s1690_s19 = scalar_lea.hbm %s2347_s3, 128  ;;  %p2720_p5 = scmp.ne.s32.totalorder %s2702_s10, 0 }
  0xa8   : > { %p1691_p7 = scmp.ne.s32.totalorder %s2347_s3, %s1690_s19  ;;  %s1695_s27 = scalar_lea.hbm %s2629_s0, 256 }
  0xa9   : > { %p1696_p10 = scmp.lt.u32.totalorder %s2347_s3, %s2629_s0  ;;  %p1697_p12 = scmp.lt.u32.totalorder %s1695_s27, %s1690_s19 }
  0xaa   : > { %p1693_p6 = pnand %p1691_p7, %p2720_p5  ;;  %p1699_p3 = scmp.lt.u32.totalorder %s1690_s19, %s2347_s3 }
  0xab   : > { %p1698_p1 = por %p1697_p12, %p1696_p10 }
  0xac   : > { %p1694_p13 = pneg %p1693_p6 }
  0xad   : > { %p1700_p0 = por %p1699_p3, %p1698_p1 }
  0xaf   : > { %p1701_p2 = pnand %p1700_p0, %p1694_p13 }
  0xb1   : > { %1704 = shalt.err (!%p1701_p2)
}
  0xb2   : > { %s1705_s26 = scalar_lea.vmem %s391_s8, 128  ;;  %s1984_s21 = smov [#allocation3]  }
  0xb3   : > { %p1706_p9 = scmp.ne.s32.totalorder %s391_s8, %s1705_s26  ;;  %s1710_s17 = sshll.u32 %s1984_s21, 4  ;;  %s1711_s17 = int_to_ptr.vmem [resolvable:$false] %s1710_s17 }
  0xb4   : > { %s1712_s16 = scalar_lea.vmem %s1711_s17, 256  ;;  %p1713_p6 = scmp.lt.s32.totalorder %s391_s8, %s1711_s17 }
  0xb5   : > { %p1708_p8 = pnand %p1706_p9, %p2720_p5  ;;  %p1714_p11 = scmp.lt.s32.totalorder %s1712_s16, %s1705_s26 }
  0xb7   : > { %p1709_p7 = pneg %p1708_p8  ;;  %p1715_p4 = por %p1714_p11, %p1713_p6 }
  0xb9   : > { %p1716_p10 = pnand %p1715_p4, %p1709_p7 }
  0xbb   : > { %1719 = shalt.err (!%p1716_p10)
}
  0xbc   : > { %p2721_p12 = scmp.ne.s32.totalorder %s2699_s29, 0  ;;  %s2373_s27 = scalar_lea.hbm %s2631_s2, %s2148_s20 }
  0xbd   : > { %s419_s30 = scalar_lea.vmem [#allocation8], %s2152_s11  ;;  %s1720_s26 = scalar_lea.hbm %s2373_s27, 128 }
  0xbe   : > { %1445 = dma.hbm_to_vmem [thread:$0]  (!%p2721_p12), %s2347_s3, 128, %s391_s8, %s380_s18  }
  0xbf   : > { %s426_s23 = sshll.u32 %s419_s30, 4  ;;  %p1721_p4 = scmp.ne.s32.totalorder %s2373_s27, %s1720_s26  ;;  %s427_s23 = int_to_ptr.vmem [resolvable:$true] %s426_s23 }
  0xc0   : > { %s1725_s3 = scalar_lea.hbm %s2631_s2, 256  ;;  %p1726_p1 = scmp.lt.u32.totalorder %s2373_s27, %s2631_s2 }
  0xc1   : > { %p1723_p11 = pnand %p1721_p4, %p2720_p5  ;;  %p1727_p3 = scmp.lt.u32.totalorder %s1725_s3, %s1720_s26 }
  0xc2   : > { %p1729_p2 = scmp.lt.u32.totalorder %s1720_s26, %s2373_s27 }
  0xc3   : > { %p1724_p13 = pneg %p1723_p11  ;;  %p1728_p0 = por %p1727_p3, %p1726_p1 }
  0xc5   : > { %p1730_p9 = por %p1729_p2, %p1728_p0 }
  0xc7   : > { %p1731_p8 = pnand %p1730_p9, %p1724_p13 }
  0xc9   : > { %1734 = shalt.err (!%p1731_p8)
}
  0xca   : > { %s1735_s11 = scalar_lea.vmem %s427_s23, 128  ;;  %s1985_s20 = smov [#allocation8]  }
  0xcb   : > { %p1736_p7 = scmp.ne.s32.totalorder %s427_s23, %s1735_s11  ;;  %s1740_s16 = sshll.u32 %s1985_s20, 4  ;;  %s1741_s16 = int_to_ptr.vmem [resolvable:$false] %s1740_s16 }
  0xcc   : > { %s1742_s19 = scalar_lea.vmem %s1741_s16, 256  ;;  %p1743_p4 = scmp.lt.s32.totalorder %s427_s23, %s1741_s16 }
  0xcd   : > { %p1738_p6 = pnand %p1736_p7, %p2720_p5  ;;  %p1744_p11 = scmp.lt.s32.totalorder %s1742_s19, %s1735_s11 }
  0xcf   : > { %p1739_p10 = pneg %p1738_p6  ;;  %p1745_p12 = por %p1744_p11, %p1743_p4 }
  0xd1   : > { %p1746_p1 = pnand %p1745_p12, %p1739_p10 }
  0xd3   : > { %1749 = shalt.err (!%p1746_p1)
}
  0xd4   : > { %p2722_p3 = scmp.ne.s32.totalorder %s2699_s29, 0  ;;  %s2723_s13 = scalar_lea.sflag [#allocation7], %s2161_s12 }
  0xd5   : > { %s2396_s10 = sshll.u32 %s1970_s25, 4  ;;  %s454_s30 = scalar_lea.vmem [#allocation11], %s2217_s24 }
  0xd6   : > { %1451 = dma.hbm_to_vmem [thread:$0]  (!%p2722_p3), %s2373_s27, 128, %s427_s23, %s2723_s13  }
  0xd7   : > { %s461_s26 = sshll.u32 %s454_s30, 4  ;;  %s459_s3 = scalar_lea.hbm %s2633_s4, %s2396_s10  ;;  %s462_s26 = int_to_ptr.vmem [resolvable:$true] %s461_s26 }
  0xd8   : > { %s1750_s8 = scalar_lea.hbm %s459_s3, 16  ;;  %p2724_p12 = scmp.ne.s32.totalorder %s2713_s28, 0 }
  0xd9   : > { %p1751_p5 = scmp.ne.s32.totalorder %s459_s3, %s1750_s8  ;;  %s1755_s11 = scalar_lea.hbm %s2633_s4, 64 }
  0xda   : > { %p1756_p2 = scmp.lt.u32.totalorder %s459_s3, %s2633_s4  ;;  %p1757_p9 = scmp.lt.u32.totalorder %s1755_s11, %s1750_s8 }
  0xdb   : > { %p1753_p13 = pnand %p1751_p5, %p2724_p12  ;;  %p1759_p7 = scmp.lt.u32.totalorder %s1750_s8, %s459_s3 }
  0xdc   : > { %p1758_p8 = por %p1757_p9, %p1756_p2 }
  0xdd   : > { %p1754_p0 = pneg %p1753_p13 }
  0xde   : > { %p1760_p6 = por %p1759_p7, %p1758_p8 }
  0xe0   : > { %p1761_p10 = pnand %p1760_p6, %p1754_p0 }
  0xe2   : > { %1764 = shalt.err (!%p1761_p10)
}
  0xe3   : > { %s1765_s20 = scalar_lea.vmem %s462_s26, 16  ;;  %s1986_s16 = smov [#allocation11]  }
  0xe4   : > { %p1766_p4 = scmp.ne.s32.totalorder %s462_s26, %s1765_s20  ;;  %s1770_s19 = sshll.u32 %s1986_s16, 4  ;;  %s1771_s19 = int_to_ptr.vmem [resolvable:$false] %s1770_s19 }
  0xe5   : > { %s1772_s13 = scalar_lea.vmem %s1771_s19, 32  ;;  %p1773_p3 = scmp.lt.s32.totalorder %s462_s26, %s1771_s19 }
  0xe6   : > { %p1768_p11 = pnand %p1766_p4, %p2724_p12  ;;  %p1774_p5 = scmp.lt.s32.totalorder %s1772_s13, %s1765_s20 }
  0xe8   : > { %p1769_p1 = pneg %p1768_p11  ;;  %p1775_p13 = por %p1774_p5, %p1773_p3 }
  0xea   : > { %p1776_p2 = pnand %p1775_p13, %p1769_p1 }
  0xec   : > { %1779 = shalt.err (!%p1776_p2)
}
  0xed   : > { %p2725_p9 = scmp.ne.s32.totalorder %s2701_s9, 0  ;;  %s2726_s30 = scalar_lea.sflag [#allocation10], %s2161_s12 }
  0xee   : > { %s2421_s8 = scalar_lea.hbm %s2635_s6, %s2396_s10  ;;  %s489_s29 = scalar_lea.vmem [#allocation14], %s2217_s24 }
  0xef   : > { %1457 = dma.hbm_to_vmem [thread:$0]  (!%p2725_p9), %s459_s3, 16, %s462_s26, %s2726_s30  }
  0xf0   : > { %s496_s18 = sshll.u32 %s489_s29, 4  ;;  %s2727_s23 = sld [smem:[#allocation44_spill]]  ;;  %s497_s18 = int_to_ptr.vmem [resolvable:$true] %s496_s18 }
  0xf1   : > { %s1780_s19 = scalar_lea.hbm %s2421_s8, 16  ;;  %s1785_s13 = scalar_lea.hbm %s2635_s6, 64 }
  0xf2   : > { %p1781_p0 = scmp.ne.s32.totalorder %s2421_s8, %s1780_s19  ;;  %p1786_p6 = scmp.lt.u32.totalorder %s2421_s8, %s2635_s6 }
  0xf3   : > { %p1787_p10 = scmp.lt.u32.totalorder %s1785_s13, %s1780_s19  ;;  %p1789_p11 = scmp.lt.u32.totalorder %s1780_s19, %s2421_s8 }
  0xf4   : > { %p1783_p8 = pnand %p1781_p0, %p2724_p12 }
  0xf5   : > { %p1788_p4 = por %p1787_p10, %p1786_p6 }
  0xf6   : > { %s2728_s16 = smov %s2727_s23  ;;  %s2428_s20 = scalar_lea.hbm %s2727_s23, %s2396_s10 }
  0xf7   : > { %p1784_p7 = pneg %p1783_p8  ;;  %p1790_p1 = por %p1789_p11, %p1788_p4 }
  0xf9   : > { %p1791_p3 = pnand %p1790_p1, %p1784_p7 }
  0xfb   : > { %1794 = shalt.err (!%p1791_p3)
}
  0xfc   : > { %s1795_s10 = scalar_lea.vmem %s497_s18, 16  ;;  %s1987_s17 = smov [#allocation14]  }
  0xfd   : > { %p1796_p5 = scmp.ne.s32.totalorder %s497_s18, %s1795_s10  ;;  %s1800_s29 = sshll.u32 %s1987_s17, 4  ;;  %s1801_s29 = int_to_ptr.vmem [resolvable:$false] %s1800_s29 }
  0xfe   : > { %s1802_s11 = scalar_lea.vmem %s1801_s29, 32  ;;  %p1803_p0 = scmp.lt.s32.totalorder %s497_s18, %s1801_s29 }
  0xff   : > { %p1798_p13 = pnand %p1796_p5, %p2724_p12  ;;  %p1804_p8 = scmp.lt.s32.totalorder %s1802_s11, %s1795_s10 }
 0x101   : > { %p1799_p2 = pneg %p1798_p13  ;;  %p1805_p9 = por %p1804_p8, %p1803_p0 }
 0x103   : > { %p1806_p6 = pnand %p1805_p9, %p1799_p2 }
 0x105   : > { %1809 = shalt.err (!%p1806_p6)
}
 0x106   : > { %p2729_p10 = scmp.ne.s32.totalorder %s2701_s9, 0  ;;  %s524_s27 = scalar_lea.vmem [#allocation17], %s2217_s24 }
 0x107   : > { %s531_s23 = sshll.u32 %s524_s27, 4  ;;  %s1810_s19 = scalar_lea.hbm %s2428_s20, 16  ;;  %s532_s23 = int_to_ptr.vmem [resolvable:$true] %s531_s23 }
 0x108   : > { %1463 = dma.hbm_to_vmem [thread:$0]  (!%p2729_p10), %s2421_s8, 16, %s497_s18, %s469_s14  }
 0x109   : > { %p1811_p7 = scmp.ne.s32.totalorder %s2428_s20, %s1810_s19  ;;  %s1815_s13 = scalar_lea.hbm %s2728_s16, 64 }
 0x10a   : > { %p1816_p11 = scmp.lt.u32.totalorder %s2428_s20, %s2728_s16  ;;  %p1817_p1 = scmp.lt.u32.totalorder %s1815_s13, %s1810_s19 }
 0x10b   : > { %p1813_p9 = pnand %p1811_p7, %p2724_p12  ;;  %p1819_p5 = scmp.lt.u32.totalorder %s1810_s19, %s2428_s20 }
 0x10c   : > { %p1818_p3 = por %p1817_p1, %p1816_p11 }
 0x10d   : > { %p1814_p4 = pneg %p1813_p9 }
 0x10e   : > { %p1820_p13 = por %p1819_p5, %p1818_p3 }
 0x110   : > { %p1821_p2 = pnand %p1820_p13, %p1814_p4 }
 0x112   : > { %1824 = shalt.err (!%p1821_p2)
}
 0x113   : > { %s1825_s14 = scalar_lea.vmem %s532_s23, 16  ;;  %s1988_s24 = smov [#allocation17]  }
 0x114   : > { %p1826_p0 = scmp.ne.s32.totalorder %s532_s23, %s1825_s14  ;;  %s1830_s8 = sshll.u32 %s1988_s24, 4  ;;  %s1831_s8 = int_to_ptr.vmem [resolvable:$false] %s1830_s8 }
 0x115   : > { %s1832_s18 = scalar_lea.vmem %s1831_s8, 32  ;;  %p1833_p7 = scmp.lt.s32.totalorder %s532_s23, %s1831_s8 }
 0x116   : > { %p1828_p8 = pnand %p1826_p0, %p2724_p12  ;;  %p1834_p9 = scmp.lt.s32.totalorder %s1832_s18, %s1825_s14 }
 0x118   : > { %p1829_p6 = pneg %p1828_p8  ;;  %p1835_p10 = por %p1834_p9, %p1833_p7 }
 0x11a   : > { %p1836_p1 = pnand %p1835_p10, %p1829_p6 }
 0x11c   : > { %1839 = shalt.err (!%p1836_p1)
}
 0x11d   : > { %p2730_p11 = scmp.ne.s32.totalorder %s2701_s9, 0  ;;  %s2731_s10 = sld [smem:[#allocation38_spill]] }
 0x11f   : > { %1469 = dma.hbm_to_vmem [thread:$0]  (!%p2730_p11), %s2428_s20, 16, %s532_s23, %s504_s15  }
 0x123   : > { %p2732_p4 = scmp.ne.s32.totalorder %s2731_s10, 0 }
 0x124   : > { %s2733_s28 = sld [smem:[#allocation28_spill]] (!%p2732_p4)  ;;  %s2734_s17 = sld [smem:[#allocation34_spill]] (!%p2732_p4) }
 0x125   : > { %547 = sbr.rel (%p2732_p4) target bundleno = 1414 (0x586), region = 64 }
 0x12a   : > { %s2472_s29 = sand.u32 (!%p2732_p4), 1, %s2733_s28   ;;  %p2735_p12 = scmp.ne.s32.totalorder (!%p2732_p4), %s2734_s17, 0 }
 0x12b   : > { %s2475_s11 = sshll.u32 (!%p2732_p4), %s2472_s29, 3  ;;  %s550_s27 = scalar_lea.sflag (!%p2732_p4), [#allocation4], %s2472_s29 }
 0x12c   : > { %s553_s19 = scalar_lea.vmem [#allocation3], %s2475_s11 }
 0x12d   : > { %1913 = dma.done.wait (%p2735_p12), %s550_s27, 128  }
 0x12e   : > { %1915 = vsyncadd (%p2735_p12), %s550_s27, 4294967168  ;;  %s2736_s9 = sld [smem:[#allocation33_spill]]  ;;  %s562_s20 = scalar_lea.vmem [#allocation6], %s2475_s11 }
 0x134   : > { %s558_s12 = sand.u32 1, %s2736_s9  }
 0x135   : > { %s559_s15 = scalar_lea.sflag [#allocation7], %s558_s12 }
 0x136   : > { %1917 = dma.done.wait (%p2735_p12), %s559_s15, 256  }
 0x137   : > { %1919 = vsyncadd (%p2735_p12), %s559_s15, 4294967040  ;;  %s2737_s23 = sld [smem:[#allocation25_spill]]  ;;  %s2738_s26 = sld [smem:[#allocation35_spill]] }
 0x138   : > { %s577_s21 = scalar_lea.sflag [#allocation10], %s558_s12 }
 0x13d   : > { %s2490_s3 = sand.u32 1, %s2737_s23   ;;  %p2739_p10 = scmp.ne.s32.totalorder %s2738_s26, 0 }
 0x13e   : > { %s2493_s13 = sshll.u32 %s2490_s3, 3 }
 0x13f   : > { %s580_s14 = scalar_lea.vmem [#allocation9], %s2493_s13 }
 0x140   : > { %1921 = dma.done.wait (%p2739_p10), %s577_s21, 144  }
 0x141   : > { %1923 = vsyncadd (%p2739_p10), %s577_s21, 4294967152  ;;  %s594_s8 = scalar_lea.sflag [#allocation13], %s558_s12  ;;  %s597_s18 = scalar_lea.vmem [#allocation12], %s2493_s13 }
 0x142   : > { %1925 = dma.done.wait (%p2739_p10), %s594_s8, 144  }
 0x143   : > { %1927 = vsyncadd (%p2739_p10), %s594_s8, 4294967152  ;;  %s611_s28 = scalar_lea.sflag [#allocation16], %s558_s12  ;;  %s614_s17 = scalar_lea.vmem [#allocation15], %s2493_s13 }
 0x144   : > { %1929 = dma.done.wait (%p2739_p10), %s611_s28, 144  }
 0x145   : > { %1931 = vsyncadd (%p2739_p10), %s611_s28, 4294967152  ;;  %s2740_s27 = sld [smem:[#allocation29_spill]]  ;;  %s2741_s8 = sld [smem:[#allocation45_spill]] }
 0x146   : > { %s622_s10 = scalar_lea.vmem [#allocation17], %s2490_s3  ;;  %s701_s12 = scalar_lea.vmem [#allocation18], %s2475_s11 }
 0x14b   : > { %p702_p3 = scmp.lt.s32.totalorder %s2740_s27, 3  ;;  %p1358_p5 = scmp.ne.s32.totalorder %s2740_s27, 0 }
 0x14c   : > { %s2742_s28 = sld [smem:[#allocation46_spill]] (!%p1358_p5)  ;;  %vm718_vm0 = vcmask (!%p1358_p5), 261120  }
 0x14d   : > { %s703_s9 = scalar_select %p702_p3, %s2740_s27, 3 }
 0x14e   : > { %710 = sbr.rel (%p1358_p5) target bundleno = 341 (0x155), region = 104 }
 0x14f   : > { %s1357_s15 = sshll.u32 %s703_s9, 3 }
 0x150   : > { %s2518_s24 = scalar_lea.vmem %s2741_s8, %s1357_s15 }
 0x152   : > { %v1359_v0 = vld [vmem:[%s2742_s28] ss:$0 sm:$0xff] (!%p1358_p5) }
 0x153   : > { %719 = vst.msk [vmem:[#allocation2] sm:$0xff] (!%p1358_p5), %vm718_vm0, %v1359_v0 }
 0x155 PF: > { %vm735_vm1 = vcmask 261120   ;;  %v783_v1 = vld [vmem:[%s597_s18] sm:$0xff]  ;;  %v726_v2 = vld [vmem:[%s580_s14] sm:$0xff]  ;;  %v1989_v3 = vmov 0.0   ;;  %vm1990_vm2 = vmmov 0   ;;  %s2745_s30 = scalar_lea.vmem [#allocation11], %s2490_s3 }
 0x156   : > { %1392 = vmatprep.subr.bf16.mxu1 %v1989_v3  ;;  %v784_v4 = vpack.c.bf16 %v783_v1, %v783_v1  ;;  %1386 = vmatprep.subr.bf16.mxu0 %v1989_v3  ;;  %v727_v5 = vpack.c.bf16 %v726_v2, %v726_v2  ;;  %v722_v8 = vld [vmem:[%s562_s20] sm:$0xff]  ;;  %v720_v9 = vld [vmem:[%s553_s19] sm:$0xff]  ;;  %s2743_s19 = scalar_lea.vmem [#allocation8], %s2475_s11  ;;  %s2744_s20 = scalar_lea.vmem [#allocation14], %s2490_s3  ;;  %vm895_vm3 = vcmask 64512   ;;  %vm956_vm4 = vcmask 1043456  }
 0x157   : > { %1394 = vmatprep.mubr.msk.bf16.mxu1 %vm1990_vm2, %v1989_v3  ;;  %1388 = vmatprep.mubr.msk.bf16.mxu0 %vm1990_vm2, %v1989_v3  ;;  %v723_v10 = vpack.c.bf16 %v722_v8, %v722_v8  ;;  %v721_v11 = vpack.c.bf16 %v720_v9, %v720_v9  ;;  %v838_v12 = vld [vmem:[%s614_s17] sm:$0xff]  ;;  %v724_v15 = vld [vmem:[%s2743_s19] sm:$0xff]  ;;  %s2746_s3 = sld [smem:[#allocation29_spill]] }
 0x158   : > { %v796_v6 = vsel %vm735_vm1, %v784_v4, 0  ;;  %v740_v7 = vsel %vm735_vm1, %v727_v5, 0  ;;  %v839_v13 = vpack.c.bf16 %v838_v12, %v838_v12  ;;  %v725_v16 = vpack.c.bf16 %v724_v15, %v724_v15  ;;  %v1362_v17 = vld [vmem:[%s2744_s20] ss:$0 sm:$0xff] }
 0x159   : > { %1393 = vmatpush3.bf16.xpose.msra.mxu1 %v796_v6  ;;  %1387 = vmatpush3.bf16.xpose.msra.mxu0 %v740_v7  ;;  %v1360_v18 = vld [vmem:[%s2745_s30] ss:$0 sm:$0xff] }
 0x15a   : > { %1404 = vmatprep.subr.bf16.mxu1 %v1989_v3  ;;  %1398 = vmatprep.subr.bf16.mxu0 %v1989_v3  ;;  %v851_v14 = vsel %vm735_vm1, %v839_v13, 0  ;;  %v1364_v38 = vld [vmem:[%s622_s10] ss:$0 sm:$0xff] }
 0x15b   : > { %v1004_v52 = vld [vmem:[%s2518_s24] sm:$0xff] }
 0x15c   : > { %v1005_v53 = vpack.c.bf16 %v1004_v52, %v1004_v52  ;;  %v1002_v63 = vld [vmem:[#allocation2] sm:$0xff] }
 0x15d   : > { %p1369_p13 = scmp.ne.s32.totalorder %s2746_s3, 3 }
 0x15e   : > { %v1010_v54 = vsel %vm956_vm4, %v1005_v53, 0 }
 0x160   : > { %1395 = vmatmul.mubr.msk.bf16.vlgmr.msra.gmra.mrb[0].mxu1 %vm735_vm1, %v723_v10  ;;  %1389 = vmatmul.mubr.msk.bf16.vlgmr.msra.gmra.mrb[0].mxu0 %vm735_vm1, %v721_v11 }
 0x161   : > { %1406 = vmatprep.mubr.msk.bf16.mxu1 %vm1990_vm2, %v1989_v3  ;;  %1400 = vmatprep.mubr.msk.bf16.mxu0 %vm1990_vm2, %v1989_v3 }
 0x162   : > { %1399 = vmatpush3.bf16.xpose.msra.mxu0 %v851_v14 }
 0x163   : > { %1410 = vmatprep.subr.bf16.mxu0 %v1989_v3 }
 0x169   : > { %1401 = vmatmul.mubr.msk.bf16.vlgmr.msra.gmra.mrb[4].mxu0 %vm735_vm1, %v725_v16 }
 0x16a   : > { %1412 = vmatprep.mubr.msk.bf16.mxu0 %vm1990_vm2, %v1989_v3 }
 0x233   : > { %v832_v19 = vpop.f32.mrb[0].mxu1  ;;  %v776_v20 = vpop.f32.mrb[0].mxu0 }
 0x234   : > { %v833_v21 = vadd.f32 %v1362_v17, %v832_v19  ;;  %v1396_v22 = vpop.f32.mrb[1].mxu1  ;;  %v777_v23 = vadd.f32 %v1360_v18, %v776_v20  ;;  %v1390_v24 = vpop.f32.mrb[1].mxu0 }
 0x235   : > { %v835_v25 = vpop.f32.mrb[2].mxu1  ;;  %v779_v26 = vpop.f32.mrb[2].mxu0 }
 0x236   : > { %v894_v27 = vpack.c.bf16 %v833_v21, %v833_v21  ;;  %v1397_v28 = vpop.f32.mrb[3].mxu1  ;;  %v1391_v29 = vpop.f32.mrb[3].mxu0  ;;  %v782_v31 = vmul.f32 0.35355338, %v777_v23 }
 0x238   : > { %v900_v30 = vsel %vm895_vm3, %v894_v27, 0  ;;  %v893_v32 = vpack.c.bf16 %v782_v31, %v782_v31 }
 0x239   : > { %1405 = vmatpush3.bf16.xpose.msra.mxu1 %v900_v30 }
 0x23a   : > { %1416 = vmatprep.subr.bf16.mxu1 %v1989_v3 }
 0x23c   : > { %v887_v39 = vpop.f32.mrb[4].mxu0 }
 0x23d   : > { %v888_v40 = vadd.f32 %v1364_v38, %v887_v39  ;;  %v1402_v41 = vpop.f32.mrb[5].mxu0 }
 0x23e   : > { %v890_v42 = vpop.f32.mrb[6].mxu0 }
 0x23f   : > { %v952_v43 = vpack.c.bf16 %v888_v40, %v888_v40  ;;  %v1403_v44 = vpop.f32.mrb[7].mxu0 }
 0x240   : > { %1407 = vmatmul.mubr.msk.bf16.vlgmr.msra.gmra.mrb[4].mxu1 %vm895_vm3, %v893_v32 }
 0x241   : > { %1418 = vmatprep.mubr.msk.bf16.mxu1 %vm1990_vm2, %v1989_v3  ;;  %v958_v45 = vsel %vm956_vm4, %v952_v43, 0  ;;  %1417 = vmatpush3.bf16.msra.mxu1 %v1010_v54 }
 0x242   : > { %1411 = vmatpush3.bf16.msra.mxu0 %v958_v45 }
 0x313   : > { %v936_v33 = vpop.f32.mrb[4].mxu1 }
 0x314   : > { %v1408_v34 = vpop.f32.mrb[5].mxu1  ;;  %v942_v35 = vsel %vm895_vm3, %v936_v33, -inf }
 0x315   : > { %943 = vmax.xlane.f32.xlu0 %v942_v35  ;;  %v939_v36 = vpop.f32.mrb[6].mxu1 }
 0x316   : > { %v1409_v37 = vpop.f32.mrb[7].mxu1 }
 0x3a2   : > { %v944_v46 = vpop.xlane.xlu0 %943 }
 0x3a3   : > { %v945_v47 = vsub.f32 %v936_v33, %v944_v46 }
 0x3a5   : > { %v946_v48 = vmul.f32 1.442695, %v945_v47 }
 0x3a7   : > { %1566 = vpow2.f32 %v946_v48 }
 0x3b1   : > { %v1567_v49 = vpop.eup %1566 }
 0x3b2   : > { %v948_v50 = vsel %vm895_vm3, %v1567_v49, 0.0  ;;  %v951_v51 = vpack.c.bf16 %v1567_v49, %v1567_v49 }
 0x3b3   : > { %949 = vadd.xlane.f32.xlu0 %v948_v50 }
 0x3b4   : > { %1413 = vmatmul.mubr.msk.bf16.vlgmr.msra.gmra.mrb[8].mxu0 %vm895_vm3, %v951_v51 }
 0x440   : > { %v950_v55 = vpop.xlane.xlu0 %949 }
 0x441   : > { %1568 = vrcp.f32 %v950_v55 }
 0x44b   : > { %v1569_v56 = vpop.eup %1568 }
 0x487   : > { %v994_v57 = vpop.f32.mrb[8].mxu0 }
 0x488   : > { %v1001_v58 = vmul.f32 %v1569_v56, %v994_v57  ;;  %v1414_v59 = vpop.f32.mrb[9].mxu0 }
 0x489   : > { %v997_v60 = vpop.f32.mrb[10].mxu0 }
 0x48a   : > { %v1003_v61 = vpack.c.bf16 %v1001_v58, %v1001_v58  ;;  %v1415_v62 = vpop.f32.mrb[11].mxu0 }
 0x48c   : > { %1419 = vmatmul.mubr.msk.bf16.vlgmr.msra.gmra.mrb[8].mxu1 %vm895_vm3, %v1003_v61 }
 0x55c   : > { %1057 = sbr.rel (%p1369_p13) target bundleno = 1387 (0x56b), region = 108 }
 0x55f   : > { %v1046_v0 = vpop.f32.mrb[8].mxu1 }
 0x560   : > { %v1052_v1 = vadd.f32 %v1046_v0, %v1002_v63  ;;  %v1420_v2 = vpop.f32.mrb[9].mxu1 }
 0x561   : > { %v1049_v3 = vpop.f32.mrb[10].mxu1 }
 0x562   : > { %1053 = vst.msk [vmem:[#allocation2] sm:$0xff] %vm735_vm1, %v1052_v1  ;;  %v1421_v4 = vpop.f32.mrb[11].mxu1 }
 0x569   : > { %v1058_v5 = vld [vmem:[#allocation2] sm:$0xff] }
 0x56a   : > { %1059 = vst.msk [vmem:[%s701_s12] sm:$0xff] %vm735_vm1, %v1058_v5 }
 0x56b PF: > { %s2747_s13 = sld [smem:[#allocation30_spill]]  ;;  %s2748_s14 = sld [smem:[#allocation36_spill]] }
 0x56c   : > { %s2749_s17 = sld [smem:[#allocation47_spill]]  ;;  %s1074_s15 = sshll.u32 %s701_s12, 4  ;;  %s1075_s15 = int_to_ptr.vmem [resolvable:$true] %s1074_s15 }
 0x56d   : > { %s1061_s23 = scalar_lea.sflag [#allocation5], %s2472_s29  ;;  %s1840_s21 = scalar_lea.vmem %s1075_s15, 128 }
 0x56e   : > { %p1841_p2 = scmp.ne.s32.totalorder %s1075_s15, %s1840_s21  ;;  %s1991_s8 = smov [#allocation18]  }
 0x56f   : > { %s1844_s26 = sshll.u32 %s1991_s8, 4  ;;  %s1845_s26 = int_to_ptr.vmem [resolvable:$false] %s1844_s26 }
 0x570   : > { %s1846_s28 = scalar_lea.vmem %s1845_s26, 256  ;;  %p1847_p7 = scmp.lt.s32.totalorder %s1075_s15, %s1845_s26 }
 0x571   : > { %s1371_s24 = sshll.u32 %s2747_s13, 7  ;;  %p2751_p0 = scmp.ne.s32.totalorder %s2748_s14, 0 }
 0x572   : > { %s2750_s9 = smov %s2749_s17  ;;  %s2570_s27 = scalar_lea.hbm %s2749_s17, %s1371_s24 }
 0x573   : > { %p1842_p8 = pnand %p1841_p2, %p2751_p0  ;;  %p1848_p9 = scmp.lt.s32.totalorder %s1846_s28, %s1840_s21 }
 0x575   : > { %p1843_p6 = pneg %p1842_p8  ;;  %p1849_p1 = por %p1848_p9, %p1847_p7 }
 0x577   : > { %p1850_p11 = pnand %p1849_p1, %p1843_p6 }
 0x579   : > { %1853 = shalt.err (!%p1850_p11)
}
 0x57a   : > { %s1854_s29 = scalar_lea.hbm %s2570_s27, 128  ;;  %s1858_s19 = scalar_lea.hbm %s2750_s9, 256 }
 0x57b   : > { %p1855_p4 = scmp.ne.s32.totalorder %s2570_s27, %s1854_s29  ;;  %p1859_p3 = scmp.lt.u32.totalorder %s2570_s27, %s2750_s9 }
 0x57c   : > { %p1860_p5 = scmp.lt.u32.totalorder %s1858_s19, %s1854_s29  ;;  %p1862_p2 = scmp.lt.u32.totalorder %s1854_s29, %s2570_s27 }
 0x57d   : > { %p1856_p12 = pnand %p1855_p4, %p2751_p0 }
 0x57e   : > { %p1861_p13 = por %p1860_p5, %p1859_p3 }
 0x57f   : > { %p1857_p10 = pneg %p1856_p12 }
 0x580   : > { %p1863_p8 = por %p1862_p2, %p1861_p13 }
 0x582   : > { %p1864_p6 = pnand %p1863_p8, %p1857_p10 }
 0x584   : > { %1867 = shalt.err (!%p1864_p6)
}
 0x585   : > { %1440 = dma.vmem_to_hbm [thread:$0]  (%p2751_p0), %s1075_s15, 128, %s2570_s27, %s1061_s23  }
 0x586 PF: > { %s2752_s3 = sld [smem:[#allocation32_spill]]  ;;  %s2753_s13 = sld [smem:[#allocation27_spill]] }
 0x587   : > { %s2754_s24 = sld [smem:[#allocation37_spill]] }
 0x58c   : > { %p1475_p7 = scmp.ge.s32.totalorder %s2752_s3, 2  ;;  %s1086_s18 = sand.u32 1, %s2753_s13  }
 0x58d   : > { %p2755_p9 = scmp.ne.s32.totalorder %s2754_s24, 0  ;;  %s1087_s10 = scalar_lea.sflag [#allocation5], %s1086_s18 }
 0x58f   : > { %p1471_p1 = pnand %p1475_p7, %p2755_p9 }
 0x591   : > { %1933 = dma.done.wait (!%p1471_p1), %s1087_s10, 128  }
 0x592   : > { %1935 = vsyncadd (!%p1471_p1), %s1087_s10, 4294967168  ;;  %s39_s27 = sadd.s32 1, %s2752_s3   ;;  %s2756_s17 = sld [smem:[#allocation25_spill]] }
 0x593   : > { %p36_p11 = scmp.ge.s32.totalorder %s39_s27, 10   ;;  %s2757_s18 = sld [smem:[#allocation26_spill]] }
 0x594   : > { %s2758_s19 = sld [smem:[#allocation41_spill]]  ;;  %s2759_s20 = sld [smem:[#allocation28_spill]] }
 0x595   : > { %s2760_s24 = sld [smem:[#allocation31_spill]]  ;;  %s2761_s14 = sld [smem:[#allocation39_spill]] }
 0x596   : > { %s2762_s26 = sld [smem:[#allocation40_spill]]  ;;  %s2763_s21 = smov %s1958_s22 }
 0x597   : > { %s2764_s22 = smov %s2287_s1  ;;  %s2765_s23 = smov %s1970_s25 }
 0x598   :  { %38 = sbr.rel (!%p36_p11) target bundleno = 24 (0x18), region = 216 }
 0x59b   : > { %s2766_s25 = smov %s2761_s14 }
 0x59f   :  { %1092 = vsyncpa [#allocation4], 1 }
 0x5a0   :  { %1094 = vsyncpa [#allocation4 + $0x1], 1 }
 0x5a1   :  { %1095 = vsyncpa [#allocation7], 1 }
 0x5a2   :  { %1097 = vsyncpa [#allocation7 + $0x1], 1 }
 0x5a3   :  { %1098 = vsyncpa [#allocation10], 1 }
 0x5a4   :  { %1100 = vsyncpa [#allocation10 + $0x1], 1 }
 0x5a5   :  { %1101 = vsyncpa [#allocation13], 1 }
 0x5a6   :  { %1103 = vsyncpa [#allocation13 + $0x1], 1 }
 0x5a7   :  { %1104 = vsyncpa [#allocation16], 1 }
 0x5a8   :  { %1106 = vsyncpa [#allocation16 + $0x1], 1 }
 0x5a9   :  { %1107 = vsyncpa [#allocation5], 1 }
 0x5aa   :  { %1109 = vsyncpa [#allocation5 + $0x1], 1 }

</bundles_post_ra>
